<compile_context>
chip_gen: v5e
topology: v5e:2x2
jax: 0.10.0
libtpu: 0.0.40
codegen_flags: <defaults>
</compile_context>

<pallas_src>
import numpy as np
import jax
import jax.numpy as jnp
from jax import lax
from jax.experimental import pallas as pl
from jax.experimental.pallas import tpu as pltpu  # noqa: F401  (TPU backend assumed)

# ----------------------------- configuration --------------------------------
NB = 2                     # batch
CIN = 4                    # input channels of CoordConv
COUT = 8                   # output channels
S = 16                     # H = W (AddCoords' torch.cat requires square input)
KS = 3                     # conv kernel size
PAD = 1                    # conv padding
CIN2 = CIN + 2             # channels after AddCoords (with_r=False)
KDIM = KS * KS * CIN2      # im2col contraction dim = 54
KPAD = 64                  # padded K: clean MXU tiles; row KDIM carries the bias "ones"
HW = S * S                 # 256 lanes per batch element (lane-dense stores)
NHW = NB * HW              # 512 lanes -> one fused MXU pass for the whole batch


# ------------------------------- kernel -------------------------------------
def coordconv_kernel(xcol_ref, w_ref, out_ref):
    """Single grid step: whole batch in one MXU matmul, bias folded into K.

    xcol_ref : (KPAD, NB*HW) f32  im2col of coords-augmented padded input;
                                  row KDIM == 1.0 (bias row), rows > KDIM == 0
    w_ref    : (COUT, KPAD)  f32  conv weight rows; column KDIM holds the bias
    out_ref  : (NB, COUT, HW) f32 NCHW-flat output (256 lanes per store)
    """
    acc = jnp.dot(w_ref[...], xcol_ref[...],
                  preferred_element_type=jnp.float32)          # (COUT, NB*HW) on MXU
    for n in range(NB):                                        # static unroll
        out_ref[n, :, :] = acc[:, n * HW:(n + 1) * HW]         # 128-aligned lane slices


# ------------------------------- wrapper -------------------------------------
@jax.jit
def coordconv_forward(x_nchw, weight, bias):
    """x_nchw: (N, CIN, S, S); weight: (COUT, CIN2, KS, KS); bias: (COUT,)."""
    N, C, H, W = x_nchw.shape
    assert (N, C, H, W) == (NB, CIN, S, S), "square spatial input expected (H == W)"

    # --- AddCoords (matches the torch code for square inputs) ---------------
    coords = (jnp.arange(S, dtype=jnp.float32) * (2.0 / (S - 1))) - 1.0
    xx = jnp.broadcast_to(coords[None, None, None, :], (N, 1, S, S))  # varies along W
    yy = jnp.broadcast_to(coords[None, None, :, None], (N, 1, S, S))  # varies along H
    x_aug = jnp.concatenate([x_nchw, xx, yy], axis=1)                 # (N, CIN2, S, S)

    # --- pad + im2col once in the (jitted) wrapper ---------------------------
    x_pad = jnp.pad(x_aug, ((0, 0), (0, 0), (PAD, PAD), (PAD, PAD)))
    taps = []
    for dy in range(KS):
        for dx in range(KS):
            taps.append(x_pad[:, :, dy:dy + S, dx:dx + S].reshape(N, CIN2, HW))
    xcol = jnp.concatenate(taps, axis=1)                              # (N, KDIM, HW) rows (dy,dx,c)
    ones = jnp.ones((N, 1, HW), jnp.float32)                          # bias row
    zeros = jnp.zeros((N, KPAD - KDIM - 1, HW), jnp.float32)
    xcol = jnp.concatenate([xcol, ones, zeros], axis=1)               # (N, KPAD, HW)
    xcol2d = jnp.transpose(xcol, (1, 0, 2)).reshape(KPAD, NHW)        # lanes: n-major, hw-minor

    # weight (COUT, CIN2, KS, KS) -> (COUT, KDIM) rows in (dy, dx, c) order, bias in col KDIM
    w_row = jnp.transpose(weight, (0, 2, 3, 1)).reshape(COUT, KDIM)
    w_full = jnp.concatenate(
        [w_row.astype(jnp.float32),
         bias.reshape(COUT, 1).astype(jnp.float32),
         jnp.zeros((COUT, KPAD - KDIM - 1), jnp.float32)], axis=1)    # (COUT, KPAD)

    bytes_accessed = 4 * (KPAD * NHW + COUT * KPAD + NB * COUT * HW)
    out = pl.pallas_call(
        coordconv_kernel,
        out_shape=jax.ShapeDtypeStruct((NB, COUT, HW), jnp.float32),
        grid=(1,),                                                    # single step, no per-batch grid
        in_specs=[pl.BlockSpec((KPAD, NHW), lambda i: (0, 0)),
                  pl.BlockSpec((COUT, KPAD), lambda i: (0, 0))],
        out_specs=pl.BlockSpec((NB, COUT, HW), lambda i: (0, 0, 0)),
        cost_estimate=pl.CostEstimate(flops=2 * COUT * KPAD * NHW,
                                      bytes_accessed=bytes_accessed,
                                      transcendentals=0),
    )(xcol2d, w_full)

    # already NCHW-flat -> free reshape, no transpose back
    return out.reshape(NB, COUT, S, S)


# ----------------------------- JAX reference ---------------------------------
def coordconv_reference(x_nchw, weight, bias):
    N = x_nchw.shape[0]
    coords = (jnp.arange(S, dtype=jnp.float32) * (2.0 / (S - 1))) - 1.0
    xx = jnp.broadcast_to(coords[None, None, None, :], (N, 1, S, S))
    yy = jnp.broadcast_to(coords[None, None, :, None], (N, 1, S, S))
    x_aug = jnp.concatenate([x_nchw, xx, yy], axis=1)
    y = lax.conv_general_dilated(
        x_aug, weight, window_strides=(1, 1), padding=[(PAD, PAD), (PAD, PAD)],
        dimension_numbers=('NCHW', 'OIHW', 'NCHW'))
    return y + bias[None, :, None, None]


# --------------------------------- main ---------------------------------------
if __name__ == "__main__":
    key = jax.random.PRNGKey(0)
    kx, kw, kb = jax.random.split(key, 3)
    x = jax.random.normal(kx, (NB, CIN, S, S), jnp.float32)          # NCHW input
    fan_in = CIN2 * KS * KS
    weight = jax.random.normal(kw, (COUT, CIN2, KS, KS),
                               jnp.float32) / np.sqrt(fan_in)
    bias = 0.1 * jax.random.normal(kb, (COUT,), jnp.float32)

    out = jax.block_until_ready(coordconv_forward(x, weight, bias))
    ref = jax.block_until_ready(coordconv_reference(x, weight, bias))

    assert out.shape == (NB, COUT, S, S)
    # f32 operands with f32 MXU accumulation -> tight tolerance
    np.testing.assert_allclose(np.asarray(out), np.asarray(ref),
                               rtol=1e-4, atol=1e-4)
    print("KERNEL_OK")
</pallas_src>

<mosaic_0001>
module attributes {stable_mosaic.version = 11 : i64} {
  func.func @coordconv_kernel(%arg0: i32, %arg1: memref<64x512xf32, #tpu.memory_space<vmem>>, %arg2: memref<8x64xf32, #tpu.memory_space<vmem>>, %arg3: memref<2x8x256xf32, #tpu.memory_space<vmem>>) attributes {dimension_semantics = [#tpu.dimension_semantics<arbitrary>], iteration_bounds = array<i64: 1>, scalar_prefetch = 0 : i64, scratch_operands = 0 : i64, tpu.core_type = #tpu.core_type<tc>, window_params = [{pipeline_mode = #tpu.pipeline_mode<synchronous>, transform_indices = @transform_0, window_bounds = array<i64: 64, 512>}, {pipeline_mode = #tpu.pipeline_mode<synchronous>, transform_indices = @transform_1, window_bounds = array<i64: 8, 64>}, {pipeline_mode = #tpu.pipeline_mode<synchronous>, transform_indices = @transform_2, window_bounds = array<i64: 2, 8, 256>}]} {
    %c0 = arith.constant 0 : index
    %c0_0 = arith.constant 0 : index
    %0 = vector.load %arg2[%c0, %c0_0] : memref<8x64xf32, #tpu.memory_space<vmem>>, vector<8x64xf32>
    %c0_1 = arith.constant 0 : index
    %c0_2 = arith.constant 0 : index
    %1 = vector.load %arg1[%c0_1, %c0_2] : memref<64x512xf32, #tpu.memory_space<vmem>>, vector<64x512xf32>
    %cst = arith.constant dense<0.000000e+00> : vector<8x512xf32>
    %2 = tpu.matmul %0, %1, %cst {dimension_numbers = #tpu.dot_dimension_numbers<[1], [0], [0], [1], [0, 0, 1, 1], [], []>} : vector<8x64xf32>, vector<64x512xf32>, vector<8x512xf32> -> vector<8x512xf32>
    %3 = vector.extract_strided_slice %2 {offsets = [0, 0], sizes = [8, 256], strides = [1, 1]} : vector<8x512xf32> to vector<8x256xf32>
    %c0_3 = arith.constant 0 : index
    %c0_4 = arith.constant 0 : index
    %c0_5 = arith.constant 0 : index
    %4 = vector.load %arg3[%c0_3, %c0_4, %c0_5] : memref<2x8x256xf32, #tpu.memory_space<vmem>>, vector<1x8x256xf32>
    %5 = vector.shape_cast %4 : vector<1x8x256xf32> to vector<8x256xf32>
    %6 = vector.shape_cast %3 : vector<8x256xf32> to vector<1x8x256xf32>
    tpu.vector_store %arg3[%c0_3, %c0_4, %c0_5], %6 {strides = array<i32>} : memref<2x8x256xf32, #tpu.memory_space<vmem>>, vector<1x8x256xf32>,
    %7 = vector.extract_strided_slice %2 {offsets = [0, 256], sizes = [8, 256], strides = [1, 1]} : vector<8x512xf32> to vector<8x256xf32>
    %c1 = arith.constant 1 : index
    %c0_6 = arith.constant 0 : index
    %c0_7 = arith.constant 0 : index
    %8 = vector.load %arg3[%c1, %c0_6, %c0_7] : memref<2x8x256xf32, #tpu.memory_space<vmem>>, vector<1x8x256xf32>
    %9 = vector.shape_cast %8 : vector<1x8x256xf32> to vector<8x256xf32>
    %10 = vector.shape_cast %7 : vector<8x256xf32> to vector<1x8x256xf32>
    tpu.vector_store %arg3[%c1, %c0_6, %c0_7], %10 {strides = array<i32>} : memref<2x8x256xf32, #tpu.memory_space<vmem>>, vector<1x8x256xf32>,
    return
  }
  func.func @transform_0(%arg0: i32) -> (i32, i32) {
    %c0_i32 = arith.constant 0 : i32
    %c0_i32_0 = arith.constant 0 : i32
    %c0_i32_1 = arith.constant 0 : i32
    return %c0_i32, %c0_i32_0 : i32, i32
  }
  func.func @transform_1(%arg0: i32) -> (i32, i32) {
    %c0_i32 = arith.constant 0 : i32
    %c0_i32_0 = arith.constant 0 : i32
    %c0_i32_1 = arith.constant 0 : i32
    return %c0_i32, %c0_i32_0 : i32, i32
  }
  func.func @transform_2(%arg0: i32) -> (i32, i32, i32) {
    %c0_i32 = arith.constant 0 : i32
    %c0_i32_0 = arith.constant 0 : i32
    %c0_i32_1 = arith.constant 0 : i32
    %c0_i32_2 = arith.constant 0 : i32
    return %c0_i32, %c0_i32_0, %c0_i32_1 : i32, i32, i32
  }
}

</mosaic_0001>

<bundles_post_ra>
// kernel: coordconv_forward.1
= control target key start
LH: loop header
LB: loop body
LE: loop exit
PB: predicated region body
PF: predicated region fallthrough
CT: control target
= control target key end

     0   :  { %vm44_vm0 = vcmask 523264   ;;  %s273_s0 = inlined_call_operand.vmem [shape: f32[64,512], index: 0, kind: input, shape index: {}]   ;;  %s274_s1 = inlined_call_operand.vmem [shape: f32[8,64], index: 1, kind: input, shape index: {}]   ;;  %s275_s2 = inlined_call_operand.vmem [shape: f32[2,8,256], index: 2, kind: output, shape index: {}]  }
   0x1   :  { %v42_v0 = vld [vmem:[%s273_s0 + $0xf0] sm:$0xff]  ;;  %v43_v1 = vld [vmem:[%s273_s0 + $0xf8] sm:$0xff]  ;;  %v40_v6 = vld [vmem:[%s273_s0 + $0xe0] sm:$0xff] }
   0x2   :  { %v38_v2 = vld [vmem:[%s273_s0 + $0xd0] sm:$0xff]  ;;  %96 = vmatpush.msra.mxu2 %v42_v0  ;;  %116 = vmatpush.msra.mxu3 %v43_v1  ;;  %v39_v3 = vld [vmem:[%s273_s0 + $0xd8] sm:$0xff]  ;;  %v41_v7 = vld [vmem:[%s273_s0 + $0xe8] sm:$0xff] }
   0x3   :  { %v34_v4 = vld [vmem:[%s273_s0 + $0xb0] sm:$0xff]  ;;  %v35_v5 = vld [vmem:[%s273_s0 + $0xb8] sm:$0xff]  ;;  %v36_v8 = vld [vmem:[%s273_s0 + $0xc0] sm:$0xff]  ;;  %56 = vmatpush.msra.mxu0 %v40_v6  ;;  %76 = vmatpush.msra.mxu1 %v41_v7 }
   0x4   :  { %97 = vmatpush.msra.mxu2 %v38_v2  ;;  %117 = vmatpush.msra.mxu3 %v39_v3  ;;  %v37_v9 = vld [vmem:[%s273_s0 + $0xc8] sm:$0xff]  ;;  %v30_v10 = vld [vmem:[%s273_s0 + $0x90] sm:$0xff]  ;;  %v31_v11 = vld [vmem:[%s273_s0 + $0x98] sm:$0xff] }
   0x5   :  { %v32_v12 = vld [vmem:[%s273_s0 + $0xa0] sm:$0xff]  ;;  %v33_v13 = vld [vmem:[%s273_s0 + $0xa8] sm:$0xff]  ;;  %57 = vmatpush.msra.mxu0 %v36_v8  ;;  %77 = vmatpush.msra.mxu1 %v37_v9  ;;  %v26_v14 = vld [vmem:[%s273_s0 + $0x70] sm:$0xff] }
   0x6   :  { %98 = vmatpush.msra.mxu2 %v34_v4  ;;  %118 = vmatpush.msra.mxu3 %v35_v5  ;;  %v27_v15 = vld [vmem:[%s273_s0 + $0x78] sm:$0xff]  ;;  %v28_v16 = vld [vmem:[%s273_s0 + $0x80] sm:$0xff]  ;;  %v29_v17 = vld [vmem:[%s273_s0 + $0x88] sm:$0xff] }
   0x7   :  { %58 = vmatpush.msra.mxu0 %v32_v12  ;;  %78 = vmatpush.msra.mxu1 %v33_v13  ;;  %v22_v18 = vld [vmem:[%s273_s0 + $0x50] sm:$0xff]  ;;  %v23_v19 = vld [vmem:[%s273_s0 + $0x58] sm:$0xff]  ;;  %v24_v20 = vld [vmem:[%s273_s0 + $0x60] sm:$0xff] }
   0x8   :  { %99 = vmatpush.msra.mxu2 %v30_v10  ;;  %119 = vmatpush.msra.mxu3 %v31_v11  ;;  %v25_v21 = vld [vmem:[%s273_s0 + $0x68] sm:$0xff]  ;;  %v18_v22 = vld [vmem:[%s273_s0 + $0x30] sm:$0xff]  ;;  %v19_v23 = vld [vmem:[%s273_s0 + $0x38] sm:$0xff] }
   0x9   :  { %59 = vmatpush.msra.mxu0 %v28_v16  ;;  %79 = vmatpush.msra.mxu1 %v29_v17  ;;  %v20_v24 = vld [vmem:[%s273_s0 + $0x40] sm:$0xff]  ;;  %v21_v25 = vld [vmem:[%s273_s0 + $0x48] sm:$0xff]  ;;  %v14_v26 = vld [vmem:[%s273_s0 + $0x10] sm:$0xff] }
   0xa   :  { %100 = vmatpush.msra.mxu2 %v26_v14  ;;  %120 = vmatpush.msra.mxu3 %v27_v15  ;;  %v15_v27 = vld [vmem:[%s273_s0 + $0x18] sm:$0xff]  ;;  %v11_v28 = vld [vmem:[%s274_s1] sm:$0xff]  ;;  %v17_v30 = vld [vmem:[%s273_s0 + $0x28] sm:$0xff] }
   0xb   :  { %60 = vmatpush.msra.mxu0 %v24_v20  ;;  %80 = vmatpush.msra.mxu1 %v25_v21  ;;  %v16_v29 = vld [vmem:[%s273_s0 + $0x20] sm:$0xff]  ;;  %v13_v32 = vld [vmem:[%s273_s0 + $0x8] sm:$0xff] }
   0xc   :  { %101 = vmatpush.msra.mxu2 %v22_v18  ;;  %121 = vmatpush.msra.mxu3 %v23_v19  ;;  %v12_v31 = vld [vmem:[%s273_s0] sm:$0xff] }
   0xd   :  { %61 = vmatpush.msra.mxu0 %v20_v24  ;;  %81 = vmatpush.msra.mxu1 %v21_v25 }
   0xe   :  { %102 = vmatpush.msra.mxu2 %v18_v22  ;;  %122 = vmatpush.msra.mxu3 %v19_v23 }
   0xf   :  { %62 = vmatpush.msra.mxu0 %v16_v29  ;;  %82 = vmatpush.msra.mxu1 %v17_v30 }
  0x10   :  { %103 = vmatpush.msra.mxu2 %v14_v26  ;;  %123 = vmatpush.msra.mxu3 %v15_v27 }
  0x11   :  { %139 = vmatmul.msk.f32.vlgmr.msra.gmra.mxu2 %vm44_vm0, %v11_v28  ;;  %140 = vmatmul.msk.f32.vlgmr.msra.gmra.mxu3 %vm44_vm0, %v11_v28 }
  0x12   :  { %63 = vmatpush.msra.mxu0 %v12_v31  ;;  %83 = vmatpush.msra.mxu1 %v13_v32 }
  0x13   :  { %137 = vmatmul.msk.f32.vlgmr.msra.gmra.mxu0 %vm44_vm0, %v11_v28  ;;  %138 = vmatmul.msk.f32.vlgmr.msra.gmra.mxu1 %vm44_vm0, %v11_v28 }
  0x90   :  { %v65_v33 = vpop.f32.mrf.mxu0  ;;  %v85_v34 = vpop.f32.mrf.mxu1 }
  0x91   :  { %128 = vst [vmem:[%s275_s2] sm:$0xff] %v65_v33 }
  0x92   :  { %129 = vst [vmem:[%s275_s2 + $0x8] sm:$0xff] %v85_v34 }
  0x94   :  { %v105_v35 = vpop.f32.mrf.mxu2  ;;  %v125_v36 = vpop.f32.mrf.mxu3 }
  0x95   :  { %141 = vst [vmem:[%s275_s2 + $0x10] sm:$0xff] %v105_v35 }
  0x96   :  { %142 = vst [vmem:[%s275_s2 + $0x18] sm:$0xff] %v125_v36 }

</bundles_post_ra>
